<compile_context>
chip_gen: v7x
topology: tpu7x:2x2x1
jax: 0.10.0
libtpu: 0.0.40
codegen_flags: <defaults>
</compile_context>

<pallas_src>
import jax
import jax.numpy as jnp
from jax.experimental import pallas as pl
from jax.experimental.pallas import tpu as pltpu


# ---------------------------------------------------------------------------
# Fused kernel: [TemporalBlock x num_blocks] -> decoder, one grid step per batch
# ---------------------------------------------------------------------------
def _make_fused_tcn_kernel(num_blocks, kernel_size):
    def kernel(x_ref, *refs):
        # refs layout: [w1_0, b1_0, w2_0, b2_0, ..., dec_w, dec_b, o_ref]
        dec_w_ref = refs[4 * num_blocks]
        dec_b_ref = refs[4 * num_blocks + 1]
        o_ref = refs[4 * num_blocks + 2]

        x = x_ref[0].astype(jnp.float32)                 # (L, C)
        L = x.shape[0]

        def shift_down(inp, s):
            # y[t] = inp[t - s], zero for t < s  (causal left pad, == conv+chomp)
            if s == 0:
                return inp
            if s >= L:
                return jnp.zeros_like(inp)
            return jnp.concatenate(
                [jnp.zeros((s, inp.shape[1]), inp.dtype), inp[:L - s]], axis=0)

        def causal_conv(inp, w_ref, b_ref, dilation):
            # stack K shifted copies along lanes -> one MXU matmul
            taps = [shift_down(inp, k * dilation) for k in range(kernel_size)]
            xs = jnp.concatenate(taps, axis=-1).astype(jnp.bfloat16)  # (L, K*Cin)
            acc = jnp.dot(xs, w_ref[...], preferred_element_type=jnp.float32)
            return acc + b_ref[...]                       # (L, Cout) + (1, Cout)

        for i in range(num_blocks):
            w1, b1, w2, b2 = refs[4 * i: 4 * i + 4]
            d = 2 ** i
            h = jnp.maximum(causal_conv(x, w1, b1, d), 0.0)
            h = jnp.maximum(causal_conv(h, w2, b2, d), 0.0)
            x = jnp.maximum(h + x, 0.0)                   # identity residual

        logits = jnp.dot(x.astype(jnp.bfloat16), dec_w_ref[...],
                         preferred_element_type=jnp.float32) + dec_b_ref[...]
        o_ref[0] = logits                                 # (L, Vpad), lane-dense

    return kernel


def tcn_forward(tokens, packed, *, kernel_size):
    # Embedding lookup (XLA gather) + emb_dropout(identity)
    emb = packed["emb_table"][tokens]                     # (B, L, D) f32
    B, L, C = emb.shape
    blocks = packed["blocks"]
    nb = len(blocks)
    dec_w, dec_b = packed["dec_w"], packed["dec_b"]
    Vp = dec_w.shape[-1]

    ins = [emb]
    in_specs = [pl.BlockSpec((1, L, C), lambda b: (b, 0, 0))]
    for blk in blocks:
        for name in ("w1", "b1", "w2", "b2"):
            arr = blk[name]
            ins.append(arr)
            in_specs.append(pl.BlockSpec(arr.shape, lambda b: (0, 0)))
    for arr in (dec_w, dec_b):
        ins.append(arr)
        in_specs.append(pl.BlockSpec(arr.shape, lambda b: (0, 0)))

    logits_pad = pl.pallas_call(
        _make_fused_tcn_kernel(nb, kernel_size),
        out_shape=jax.ShapeDtypeStruct((B, L, Vp), jnp.float32),
        grid=(B,),
        in_specs=in_specs,
        out_specs=pl.BlockSpec((1, L, Vp), lambda b: (b, 0, 0)),
        compiler_params=pltpu.CompilerParams(
            dimension_semantics=("parallel",)),
    )(*ins)
    return logits_pad[..., :packed["vocab"]]


# ---------------------------------------------------------------------------
# Parameters
# ---------------------------------------------------------------------------
def build_params(key, *, input_size, output_size, num_channels, kernel_size):
    n = len(num_channels)
    keys = iter(jax.random.split(key, 2 + 4 * n))
    params = {
        "emb_table": 0.01 * jax.random.normal(
            next(keys), (output_size, input_size), jnp.float32),
        "dec_w": 0.01 * jax.random.normal(
            next(keys), (num_channels[-1], output_size), jnp.float32),
        "dec_b": jnp.zeros((1, output_size), jnp.float32),
        "blocks": [],
    }
    for i, cout in enumerate(num_channels):
        cin = input_size if i == 0 else num_channels[i - 1]
        # Reference conv2 takes n_inputs channels -> module only runs if cin == cout.
        assert cin == cout, "reference TemporalBlock requires n_inputs == n_outputs"
        # W[j] == transposed PyTorch Conv1d tap K-1-j (irrelevant for random init).
        w1 = 0.01 * jax.random.normal(next(keys), (kernel_size, cin, cout), jnp.float32)
        b1 = 0.01 * jax.random.normal(next(keys), (1, cout), jnp.float32)
        w2 = 0.01 * jax.random.normal(next(keys), (kernel_size, cout, cout), jnp.float32)
        b2 = 0.01 * jax.random.normal(next(keys), (1, cout), jnp.float32)
        params["blocks"].append({"w1": w1, "b1": b1, "w2": w2, "b2": b2})
    return params


def pack_params(params):
    """Kernel-ready params: taps stacked to (K*Cin, Cout), bf16 matmul weights,
    decoder padded to a 128-lane-dense output."""
    c_last, vocab = params["dec_w"].shape
    vpad = ((vocab + 127) // 128) * 128
    packed = {
        "emb_table": params["emb_table"],
        "vocab": vocab,
        "dec_w": jnp.zeros((c_last, vpad), jnp.bfloat16)
                   .at[:, :vocab].set(params["dec_w"].astype(jnp.bfloat16)),
        "dec_b": jnp.zeros((1, vpad), jnp.float32).at[:, :vocab].set(params["dec_b"]),
        "blocks": [],
    }
    for blk in params["blocks"]:
        K, cin, cout = blk["w1"].shape
        packed["blocks"].append({
            "w1": blk["w1"].reshape(K * cin, cout).astype(jnp.bfloat16),
            "b1": blk["b1"],
            "w2": blk["w2"].reshape(K * cout, cout).astype(jnp.bfloat16),
            "b2": blk["b2"],
        })
    return packed


# ---------------------------------------------------------------------------
# Pure-JAX reference (uses lax.conv_general_dilated; validates conv semantics
# and the tap-order mapping, with matching bf16 operand casts).
# ---------------------------------------------------------------------------
def ref_forward(tokens, params, *, kernel_size):
    x = params["emb_table"][tokens]                       # (B, L, D) f32

    def conv(inp, w_kio, b, d):
        rhs = w_kio[::-1].astype(jnp.bfloat16)            # rhs[k] = W[K-1-k]
        out = jax.lax.conv_general_dilated(
            inp.astype(jnp.bfloat16), rhs,
            window_strides=(1,),
            padding=[((kernel_size - 1) * d, 0)],          # causal left pad == chomp
            rhs_dilation=(d,),
            dimension_numbers=("NWC", "WIO", "NWC"),
            preferred_element_type=jnp.float32)
        return out + b[None]

    for i, blk in enumerate(params["blocks"]):
        d = 2 ** i
        h = jax.nn.relu(conv(x, blk["w1"], blk["b1"], d))
        h = jax.nn.relu(conv(h, blk["w2"], blk["b2"], d))
        x = jax.nn.relu(h + x)

    logits = jnp.einsum("blc,cv->blv", x.astype(jnp.bfloat16),
                        params["dec_w"].astype(jnp.bfloat16),
                        preferred_element_type=jnp.float32) + params["dec_b"][None]
    return logits


# ---------------------------------------------------------------------------
if __name__ == "__main__":
    B, L = 2, 16
    input_size = 32          # embedding dim
    output_size = 64         # vocab size (Embedding rows & decoder out)
    num_channels = [32, 32]  # must equal input_size (see note)
    kernel_size = 2

    key = jax.random.PRNGKey(0)
    k_tok, k_par = jax.random.split(key)
    tokens = jax.random.randint(k_tok, (B, L), 0, output_size, dtype=jnp.int32)
    params = build_params(k_par, input_size=input_size, output_size=output_size,
                          num_channels=num_channels, kernel_size=kernel_size)
    packed = pack_params(params)

    logits = tcn_forward(tokens, packed, kernel_size=kernel_size)
    jax.block_until_ready(logits)
    assert logits.shape == (B, L, output_size)

    ref = ref_forward(tokens, params, kernel_size=kernel_size)
    err = float(jnp.max(jnp.abs(logits - ref)))
    assert err < 1e-3, f"mismatch vs reference: max abs err {err}"

    print("KERNEL_OK")
</pallas_src>

<mosaic_0001>
module attributes {stable_mosaic.version = 11 : i64} {
  func.func @kernel(%arg0: i32, %arg1: memref<1x16x32xf32, #tpu.memory_space<vmem>>, %arg2: memref<64x32xbf16, #tpu.memory_space<vmem>>, %arg3: memref<1x32xf32, #tpu.memory_space<vmem>>, %arg4: memref<64x32xbf16, #tpu.memory_space<vmem>>, %arg5: memref<1x32xf32, #tpu.memory_space<vmem>>, %arg6: memref<64x32xbf16, #tpu.memory_space<vmem>>, %arg7: memref<1x32xf32, #tpu.memory_space<vmem>>, %arg8: memref<64x32xbf16, #tpu.memory_space<vmem>>, %arg9: memref<1x32xf32, #tpu.memory_space<vmem>>, %arg10: memref<32x128xbf16, #tpu.memory_space<vmem>>, %arg11: memref<1x128xf32, #tpu.memory_space<vmem>>, %arg12: memref<1x16x128xf32, #tpu.memory_space<vmem>>) attributes {dimension_semantics = [#tpu.dimension_semantics<parallel>], iteration_bounds = array<i64: 2>, scalar_prefetch = 0 : i64, scratch_operands = 0 : i64, tpu.core_type = #tpu.core_type<tc>, window_params = [{transform_indices = @transform_0, window_bounds = array<i64: 1, 16, 32>}, {pipeline_mode = #tpu.pipeline_mode<synchronous>, transform_indices = @transform_1, window_bounds = array<i64: 64, 32>}, {pipeline_mode = #tpu.pipeline_mode<synchronous>, transform_indices = @transform_2, window_bounds = array<i64: 1, 32>}, {pipeline_mode = #tpu.pipeline_mode<synchronous>, transform_indices = @transform_3, window_bounds = array<i64: 64, 32>}, {pipeline_mode = #tpu.pipeline_mode<synchronous>, transform_indices = @transform_4, window_bounds = array<i64: 1, 32>}, {pipeline_mode = #tpu.pipeline_mode<synchronous>, transform_indices = @transform_5, window_bounds = array<i64: 64, 32>}, {pipeline_mode = #tpu.pipeline_mode<synchronous>, transform_indices = @transform_6, window_bounds = array<i64: 1, 32>}, {pipeline_mode = #tpu.pipeline_mode<synchronous>, transform_indices = @transform_7, window_bounds = array<i64: 64, 32>}, {pipeline_mode = #tpu.pipeline_mode<synchronous>, transform_indices = @transform_8, window_bounds = array<i64: 1, 32>}, {pipeline_mode = #tpu.pipeline_mode<synchronous>, transform_indices = @transform_9, window_bounds = array<i64: 32, 128>}, {pipeline_mode = #tpu.pipeline_mode<synchronous>, transform_indices = @transform_10, window_bounds = array<i64: 1, 128>}, {transform_indices = @transform_11, window_bounds = array<i64: 1, 16, 128>}]} {
    %c0 = arith.constant 0 : index
    %c0_0 = arith.constant 0 : index
    %c0_1 = arith.constant 0 : index
    %0 = vector.load %arg1[%c0, %c0_0, %c0_1] : memref<1x16x32xf32, #tpu.memory_space<vmem>>, vector<1x16x32xf32>
    %1 = vector.shape_cast %0 : vector<1x16x32xf32> to vector<16x32xf32>
    %cst = arith.constant 0.000000e+00 : f32
    %2 = vector.broadcast %cst : f32 to vector<1x32xf32>
    %3 = vector.extract_strided_slice %1 {offsets = [0, 0], sizes = [15, 32], strides = [1, 1]} : vector<16x32xf32> to vector<15x32xf32>
    %4 = tpu.concatenate %2, %3 in 0 : vector<1x32xf32>, vector<15x32xf32> -> vector<16x32xf32>
    %5 = tpu.concatenate %1, %4 in 1 : vector<16x32xf32>, vector<16x32xf32> -> vector<16x64xf32>
    %6 = arith.truncf %5 : vector<16x64xf32> to vector<16x64xbf16>
    %c0_2 = arith.constant 0 : index
    %c0_3 = arith.constant 0 : index
    %7 = vector.load %arg2[%c0_2, %c0_3] : memref<64x32xbf16, #tpu.memory_space<vmem>>, vector<64x32xbf16>
    %cst_4 = arith.constant dense<0.000000e+00> : vector<16x32xf32>
    %8 = tpu.matmul %6, %7, %cst_4 {dimension_numbers = #tpu.dot_dimension_numbers<[1], [0], [0], [1], [0, 0, 1, 1], [], []>} : vector<16x64xbf16>, vector<64x32xbf16>, vector<16x32xf32> -> vector<16x32xf32>
    %c0_5 = arith.constant 0 : index
    %c0_6 = arith.constant 0 : index
    %9 = vector.load %arg3[%c0_5, %c0_6] : memref<1x32xf32, #tpu.memory_space<vmem>>, vector<1x32xf32>
    %10 = vector.broadcast %9 : vector<1x32xf32> to vector<16x32xf32>
    %11 = arith.addf %8, %10 : vector<16x32xf32>
    %cst_7 = arith.constant 0.000000e+00 : f32
    %12 = vector.broadcast %cst_7 : f32 to vector<16x32xf32>
    %13 = arith.maximumf %11, %12 : vector<16x32xf32>
    %cst_8 = arith.constant 0.000000e+00 : f32
    %14 = vector.broadcast %cst_8 : f32 to vector<1x32xf32>
    %15 = vector.extract_strided_slice %13 {offsets = [0, 0], sizes = [15, 32], strides = [1, 1]} : vector<16x32xf32> to vector<15x32xf32>
    %16 = tpu.concatenate %14, %15 in 0 : vector<1x32xf32>, vector<15x32xf32> -> vector<16x32xf32>
    %17 = tpu.concatenate %13, %16 in 1 : vector<16x32xf32>, vector<16x32xf32> -> vector<16x64xf32>
    %18 = arith.truncf %17 : vector<16x64xf32> to vector<16x64xbf16>
    %c0_9 = arith.constant 0 : index
    %c0_10 = arith.constant 0 : index
    %19 = vector.load %arg4[%c0_9, %c0_10] : memref<64x32xbf16, #tpu.memory_space<vmem>>, vector<64x32xbf16>
    %cst_11 = arith.constant dense<0.000000e+00> : vector<16x32xf32>
    %20 = tpu.matmul %18, %19, %cst_11 {dimension_numbers = #tpu.dot_dimension_numbers<[1], [0], [0], [1], [0, 0, 1, 1], [], []>} : vector<16x64xbf16>, vector<64x32xbf16>, vector<16x32xf32> -> vector<16x32xf32>
    %c0_12 = arith.constant 0 : index
    %c0_13 = arith.constant 0 : index
    %21 = vector.load %arg5[%c0_12, %c0_13] : memref<1x32xf32, #tpu.memory_space<vmem>>, vector<1x32xf32>
    %22 = vector.broadcast %21 : vector<1x32xf32> to vector<16x32xf32>
    %23 = arith.addf %20, %22 : vector<16x32xf32>
    %cst_14 = arith.constant 0.000000e+00 : f32
    %24 = vector.broadcast %cst_14 : f32 to vector<16x32xf32>
    %25 = arith.maximumf %23, %24 : vector<16x32xf32>
    %26 = arith.addf %25, %1 : vector<16x32xf32>
    %cst_15 = arith.constant 0.000000e+00 : f32
    %27 = vector.broadcast %cst_15 : f32 to vector<16x32xf32>
    %28 = arith.maximumf %26, %27 : vector<16x32xf32>
    %cst_16 = arith.constant 0.000000e+00 : f32
    %29 = vector.broadcast %cst_16 : f32 to vector<2x32xf32>
    %30 = vector.extract_strided_slice %28 {offsets = [0, 0], sizes = [14, 32], strides = [1, 1]} : vector<16x32xf32> to vector<14x32xf32>
    %31 = tpu.concatenate %29, %30 in 0 : vector<2x32xf32>, vector<14x32xf32> -> vector<16x32xf32>
    %32 = tpu.concatenate %28, %31 in 1 : vector<16x32xf32>, vector<16x32xf32> -> vector<16x64xf32>
    %33 = arith.truncf %32 : vector<16x64xf32> to vector<16x64xbf16>
    %c0_17 = arith.constant 0 : index
    %c0_18 = arith.constant 0 : index
    %34 = vector.load %arg6[%c0_17, %c0_18] : memref<64x32xbf16, #tpu.memory_space<vmem>>, vector<64x32xbf16>
    %cst_19 = arith.constant dense<0.000000e+00> : vector<16x32xf32>
    %35 = tpu.matmul %33, %34, %cst_19 {dimension_numbers = #tpu.dot_dimension_numbers<[1], [0], [0], [1], [0, 0, 1, 1], [], []>} : vector<16x64xbf16>, vector<64x32xbf16>, vector<16x32xf32> -> vector<16x32xf32>
    %c0_20 = arith.constant 0 : index
    %c0_21 = arith.constant 0 : index
    %36 = vector.load %arg7[%c0_20, %c0_21] : memref<1x32xf32, #tpu.memory_space<vmem>>, vector<1x32xf32>
    %37 = vector.broadcast %36 : vector<1x32xf32> to vector<16x32xf32>
    %38 = arith.addf %35, %37 : vector<16x32xf32>
    %cst_22 = arith.constant 0.000000e+00 : f32
    %39 = vector.broadcast %cst_22 : f32 to vector<16x32xf32>
    %40 = arith.maximumf %38, %39 : vector<16x32xf32>
    %cst_23 = arith.constant 0.000000e+00 : f32
    %41 = vector.broadcast %cst_23 : f32 to vector<2x32xf32>
    %42 = vector.extract_strided_slice %40 {offsets = [0, 0], sizes = [14, 32], strides = [1, 1]} : vector<16x32xf32> to vector<14x32xf32>
    %43 = tpu.concatenate %41, %42 in 0 : vector<2x32xf32>, vector<14x32xf32> -> vector<16x32xf32>
    %44 = tpu.concatenate %40, %43 in 1 : vector<16x32xf32>, vector<16x32xf32> -> vector<16x64xf32>
    %45 = arith.truncf %44 : vector<16x64xf32> to vector<16x64xbf16>
    %c0_24 = arith.constant 0 : index
    %c0_25 = arith.constant 0 : index
    %46 = vector.load %arg8[%c0_24, %c0_25] : memref<64x32xbf16, #tpu.memory_space<vmem>>, vector<64x32xbf16>
    %cst_26 = arith.constant dense<0.000000e+00> : vector<16x32xf32>
    %47 = tpu.matmul %45, %46, %cst_26 {dimension_numbers = #tpu.dot_dimension_numbers<[1], [0], [0], [1], [0, 0, 1, 1], [], []>} : vector<16x64xbf16>, vector<64x32xbf16>, vector<16x32xf32> -> vector<16x32xf32>
    %c0_27 = arith.constant 0 : index
    %c0_28 = arith.constant 0 : index
    %48 = vector.load %arg9[%c0_27, %c0_28] : memref<1x32xf32, #tpu.memory_space<vmem>>, vector<1x32xf32>
    %49 = vector.broadcast %48 : vector<1x32xf32> to vector<16x32xf32>
    %50 = arith.addf %47, %49 : vector<16x32xf32>
    %cst_29 = arith.constant 0.000000e+00 : f32
    %51 = vector.broadcast %cst_29 : f32 to vector<16x32xf32>
    %52 = arith.maximumf %50, %51 : vector<16x32xf32>
    %53 = arith.addf %52, %28 : vector<16x32xf32>
    %cst_30 = arith.constant 0.000000e+00 : f32
    %54 = vector.broadcast %cst_30 : f32 to vector<16x32xf32>
    %55 = arith.maximumf %53, %54 : vector<16x32xf32>
    %56 = arith.truncf %55 : vector<16x32xf32> to vector<16x32xbf16>
    %c0_31 = arith.constant 0 : index
    %c0_32 = arith.constant 0 : index
    %57 = vector.load %arg10[%c0_31, %c0_32] : memref<32x128xbf16, #tpu.memory_space<vmem>>, vector<32x128xbf16>
    %cst_33 = arith.constant dense<0.000000e+00> : vector<16x128xf32>
    %58 = tpu.matmul %56, %57, %cst_33 {dimension_numbers = #tpu.dot_dimension_numbers<[1], [0], [0], [1], [0, 0, 1, 1], [], []>} : vector<16x32xbf16>, vector<32x128xbf16>, vector<16x128xf32> -> vector<16x128xf32>
    %c0_34 = arith.constant 0 : index
    %c0_35 = arith.constant 0 : index
    %59 = vector.load %arg11[%c0_34, %c0_35] : memref<1x128xf32, #tpu.memory_space<vmem>>, vector<1x128xf32>
    %60 = vector.broadcast %59 : vector<1x128xf32> to vector<16x128xf32>
    %61 = arith.addf %58, %60 : vector<16x128xf32>
    %c0_36 = arith.constant 0 : index
    %c0_37 = arith.constant 0 : index
    %c0_38 = arith.constant 0 : index
    %62 = vector.load %arg12[%c0_36, %c0_37, %c0_38] : memref<1x16x128xf32, #tpu.memory_space<vmem>>, vector<1x16x128xf32>
    %63 = vector.shape_cast %62 : vector<1x16x128xf32> to vector<16x128xf32>
    %64 = vector.shape_cast %61 : vector<16x128xf32> to vector<1x16x128xf32>
    tpu.vector_store %arg12[%c0_36, %c0_37, %c0_38], %64 {strides = array<i32>} : memref<1x16x128xf32, #tpu.memory_space<vmem>>, vector<1x16x128xf32>,
    return
  }
  func.func @transform_0(%arg0: i32) -> (i32, i32, i32) {
    %c0_i32 = arith.constant 0 : i32
    %c0_i32_0 = arith.constant 0 : i32
    %c0_i32_1 = arith.constant 0 : i32
    return %arg0, %c0_i32, %c0_i32_0 : i32, i32, i32
  }
  func.func @transform_1(%arg0: i32) -> (i32, i32) {
    %c0_i32 = arith.constant 0 : i32
    %c0_i32_0 = arith.constant 0 : i32
    %c0_i32_1 = arith.constant 0 : i32
    return %c0_i32, %c0_i32_0 : i32, i32
  }
  func.func @transform_2(%arg0: i32) -> (i32, i32) {
    %c0_i32 = arith.constant 0 : i32
    %c0_i32_0 = arith.constant 0 : i32
    %c0_i32_1 = arith.constant 0 : i32
    return %c0_i32, %c0_i32_0 : i32, i32
  }
  func.func @transform_3(%arg0: i32) -> (i32, i32) {
    %c0_i32 = arith.constant 0 : i32
    %c0_i32_0 = arith.constant 0 : i32
    %c0_i32_1 = arith.constant 0 : i32
    return %c0_i32, %c0_i32_0 : i32, i32
  }
  func.func @transform_4(%arg0: i32) -> (i32, i32) {
    %c0_i32 = arith.constant 0 : i32
    %c0_i32_0 = arith.constant 0 : i32
    %c0_i32_1 = arith.constant 0 : i32
    return %c0_i32, %c0_i32_0 : i32, i32
  }
  func.func @transform_5(%arg0: i32) -> (i32, i32) {
    %c0_i32 = arith.constant 0 : i32
    %c0_i32_0 = arith.constant 0 : i32
    %c0_i32_1 = arith.constant 0 : i32
    return %c0_i32, %c0_i32_0 : i32, i32
  }
  func.func @transform_6(%arg0: i32) -> (i32, i32) {
    %c0_i32 = arith.constant 0 : i32
    %c0_i32_0 = arith.constant 0 : i32
    %c0_i32_1 = arith.constant 0 : i32
    return %c0_i32, %c0_i32_0 : i32, i32
  }
  func.func @transform_7(%arg0: i32) -> (i32, i32) {
    %c0_i32 = arith.constant 0 : i32
    %c0_i32_0 = arith.constant 0 : i32
    %c0_i32_1 = arith.constant 0 : i32
    return %c0_i32, %c0_i32_0 : i32, i32
  }
  func.func @transform_8(%arg0: i32) -> (i32, i32) {
    %c0_i32 = arith.constant 0 : i32
    %c0_i32_0 = arith.constant 0 : i32
    %c0_i32_1 = arith.constant 0 : i32
    return %c0_i32, %c0_i32_0 : i32, i32
  }
  func.func @transform_9(%arg0: i32) -> (i32, i32) {
    %c0_i32 = arith.constant 0 : i32
    %c0_i32_0 = arith.constant 0 : i32
    %c0_i32_1 = arith.constant 0 : i32
    return %c0_i32, %c0_i32_0 : i32, i32
  }
  func.func @transform_10(%arg0: i32) -> (i32, i32) {
    %c0_i32 = arith.constant 0 : i32
    %c0_i32_0 = arith.constant 0 : i32
    %c0_i32_1 = arith.constant 0 : i32
    return %c0_i32, %c0_i32_0 : i32, i32
  }
  func.func @transform_11(%arg0: i32) -> (i32, i32, i32) {
    %c0_i32 = arith.constant 0 : i32
    %c0_i32_0 = arith.constant 0 : i32
    %c0_i32_1 = arith.constant 0 : i32
    return %arg0, %c0_i32, %c0_i32_0 : i32, i32, i32
  }
}

</mosaic_0001>

<bundles_post_ra>
// kernel: tpu_custom_call.1
= control target key start
LH: loop header
LB: loop body
LE: loop exit
PB: predicated region body
PF: predicated region fallthrough
CT: control target
= control target key end

     0   :  { %s1532_s0 = inlined_call_operand.vmem [shape: f32[2,16,32], index: 0, kind: input, shape index: {}]   ;;  %s1533_s1 = inlined_call_operand.vmem [shape: bf16[64,32], index: 1, kind: input, shape index: {}]   ;;  %s1534_s2 = inlined_call_operand.vmem [shape: f32[1,32], index: 2, kind: input, shape index: {}]   ;;  %s1535_s3 = inlined_call_operand.vmem [shape: bf16[64,32], index: 3, kind: input, shape index: {}]   ;;  %s1536_s4 = inlined_call_operand.vmem [shape: f32[1,32], index: 4, kind: input, shape index: {}]   ;;  %s1537_s5 = inlined_call_operand.vmem [shape: bf16[64,32], index: 5, kind: input, shape index: {}]   ;;  %s1538_s6 = inlined_call_operand.vmem [shape: f32[1,32], index: 6, kind: input, shape index: {}]   ;;  %s1539_s7 = inlined_call_operand.vmem [shape: bf16[64,32], index: 7, kind: input, shape index: {}]   ;;  %s1540_s8 = inlined_call_operand.vmem [shape: f32[1,32], index: 8, kind: input, shape index: {}]   ;;  %s1541_s9 = inlined_call_operand.vmem [shape: bf16[32,128], index: 9, kind: input, shape index: {}]   ;;  %s1542_s10 = inlined_call_operand.vmem [shape: f32[1,128], index: 10, kind: input, shape index: {}]   ;;  %s1543_s11 = inlined_call_operand.hbm [shape: f32[2,16,128], index: 11, kind: output, shape index: {}]  }
   0x1   :  { %1544 = sst [smem:[#allocation5_spill]] %s1532_s0 }
   0x2   :  { %16 = vsyncpa [#allocation3], 0 }
   0x3   :  { %18 = vsyncpa [#allocation3 + $0x1], 0  ;;  %s1287_s17 = smov 0   ;;  %s1289_s18 = smov 0  }
   0x4   :  { %s1291_s19 = smov 0   ;;  %s1293_s20 = smov 0  }
   0x5 LB: > { %s1308_s21 = sadd.s32 4294967295, %s1219_s20   ;;  %s954_s22 = sadd.s32 4294967294, %s1219_s20   ;;  %s1219_s20 = sphi %s1293_s20, %s1551_s20   ;;  %s1215_s19 = sphi %s1291_s19, %s1550_s19   ;;  %s1211_s18 = sphi %s1289_s18, %s1549_s18   ;;  %s1207_s17 = sphi %s1287_s17, %s1548_s17  }
   0x6   : > { %s1312_s23 = sadd.s32 1, %s1219_s20   ;;  %s267_s24 = sadd.s32 1, %s1215_s19 }
   0x7   : > { %s264_s25 = ssub.s32 %s1219_s20, %s1312_s23  ;;  %p277_p0 = scmp.ne.s32.totalorder %s1215_s19, %s1211_s18 }
   0x8   : > { %p265_p1 = scmp.eq.s32.totalorder %s264_s25, 0  ;;  %p278_p2 = scmp.eq.s32.totalorder %s1308_s21, 1 }
   0x9   : > { %p283_p3 = scmp.ne.s32.totalorder %s1211_s18, %s1207_s17  ;;  %p284_p4 = scmp.eq.s32.totalorder %s954_s22, 1 }
   0xa   : > { %s1323_s26 = scalar_select %p265_p1, %s1215_s19, %s267_s24  }
   0xb   : > { %p1325_p5 = por %p278_p2, %p277_p0  ;;  %p1329_p6 = por %p284_p4, %p283_p3 }
   0xc   : > { %p957_p7 = scmp.ge.s32.totalorder %s1219_s20, 1  ;;  %p340_p8 = scmp.lt.s32.totalorder %s1219_s20, 3 }
   0xe   : > { %p341_p9 = pnand %p957_p7, %p340_p8 }
   0xf   : > { %p380_p10 = scmp.lt.s32.totalorder (!%p341_p9), %s1308_s21, 1  ;;  %v1221_v0 = vmov (!%p341_p9), 0.0   ;;  %v1139_v1 = vld [vmem:[%s1533_s1] sm:$0xff] (!%p341_p9)   ;;  %v1140_v2 = vld [vmem:[%s1533_s1 + $0x8] sm:$0xff] (!%p341_p9)   ;;  %vm1222_vm0 = vmmov (!%p341_p9), 0   ;;  %s1547_s0 = sld [smem:[#allocation5_spill]] (!%p341_p9) }
  0x10   : > { %344 = sbr.rel (%p341_p9) target bundleno = 1641 (0x669), region = 64  ;;  %1019 = vmatprep.subr.bf16.mxu0 (!%p341_p9), %v1221_v0  ;;  %1031 = vmatprep.subr.bf16.mxu1 (!%p341_p9), %v1221_v0  ;;  %v1141_v3 = vld [vmem:[%s1533_s1 + $0x10] sm:$0xff] (!%p341_p9)   ;;  %vm390_vm1 = vcmask (!%p341_p9), 1040384   ;;  %v1142_v10 = vld [vmem:[%s1533_s1 + $0x18] sm:$0xff] (!%p341_p9)   ;;  %s1223_s13 = smov (!%p341_p9), 32   ;;  %vm403_vm2 = vcmask (!%p341_p9), 261120  }
  0x11   : > { %1020 = vmatpush3.bf16.msra.mxu0 (!%p341_p9), %v1139_v1  ;;  %1027 = vmatprep.mubr.msk.bf16.mxu0 (!%p341_p9), %vm1222_vm0, %v1221_v0  ;;  %vm446_vm3 = vcmask (!%p341_p9), 523264   ;;  %v1143_v18 = vld [vmem:[%s1535_s3] sm:$0xff] (!%p341_p9)   ;;  %v1144_v19 = vld [vmem:[%s1535_s3 + $0x8] sm:$0xff] (!%p341_p9)   ;;  %v1145_v20 = vld [vmem:[%s1535_s3 + $0x10] sm:$0xff] (!%p341_p9)   ;;  %vm601_vm4 = vcmask (!%p341_p9), 1041408   ;;  %s995_s25 = sshll.u32 (!%p341_p9), %s1308_s21, 8 }
  0x12   : > { %1021 = vmatprep.subr.bf16.mxu0 (!%p341_p9), %v1221_v0  ;;  %1039 = vmatprep.mubr.msk.bf16.mxu1 (!%p341_p9), %vm1222_vm0, %v1221_v0  ;;  %v961_v21 = vld [vmem:[%s1534_s2] ss:$0 sm:$0xff] (!%p341_p9)  ;;  %v1146_v22 = vld [vmem:[%s1535_s3 + $0x18] sm:$0xff] (!%p341_p9)   ;;  %v1148_v43 = vld [vmem:[%s1537_s5 + $0x8] sm:$0xff] (!%p341_p9)   ;;  %s1489_s30 = scalar_lea.hbm (!%p341_p9), %s1543_s11, %s995_s25 }
  0x13   : > { %1032 = vmatpush3.bf16.msra.mxu1 (!%p341_p9), %v1143_v18  ;;  %v1147_v42 = vld [vmem:[%s1537_s5] sm:$0xff] (!%p341_p9)   ;;  %v1149_v44 = vld [vmem:[%s1537_s5 + $0x10] sm:$0xff] (!%p341_p9)   ;;  %v1150_v53 = vld [vmem:[%s1537_s5 + $0x18] sm:$0xff] (!%p341_p9)  }
  0x14   : > { %1033 = vmatprep.subr.bf16.mxu1 (!%p341_p9), %v1221_v0  ;;  %v967_v45 = vld [vmem:[%s1536_s4] ss:$0 sm:$0xff] (!%p341_p9) }
  0x15   : > { %1022 = vmatpush3.bf16.msra.mxu0 (!%p341_p9), %v1140_v2 }
  0x16   : > { %1023 = vmatprep.subr.bf16.mxu0 (!%p341_p9), %v1221_v0 }
  0x17   : > { %s381_s12 = scalar_select %p380_p10, %s1308_s21, 1  ;;  %1034 = vmatpush3.bf16.msra.mxu1 %v1144_v19 }
  0x18   : > { %1035 = vmatprep.subr.bf16.mxu1 %v1221_v0 }
  0x19   : > { %s994_s15 = sshll.u32 %s381_s12, 4  ;;  %1024 = vmatpush3.bf16.msra.mxu0 %v1141_v3  ;;  %s377_s12 = sand.u32 1, %s1211_s18  }
  0x1a   : > { %s384_s24 = scalar_lea.vmem %s1547_s0, %s994_s15  ;;  %1025 = vmatprep.subr.bf16.mxu0 %v1221_v0  ;;  %s958_s14 = sshll.u32 %s377_s12, 4 }
  0x1b   : > { %v1356_v4 = vld [vmem:[%s384_s24] sm:$0xff]  ;;  %v1358_v5 = vld [vmem:[%s384_s24 + $0x8] sm:$0xff]  ;;  %1036 = vmatpush3.bf16.msra.mxu1 %v1145_v20  ;;  %s379_s22 = scalar_lea.vmem [#allocation2], %s958_s14  ;;  %s1491_s14 = scalar_lea.sflag [#allocation3], %s377_s12 }
  0x1c   : > { %v391_v6 = vrot.slane %v1356_v4, 7  ;;  %v392_v7 = vrot.slane %v1358_v5, 7  ;;  %1037 = vmatprep.subr.bf16.mxu1 %v1221_v0  ;;  %s892_s24 = sshll.u32 %s379_s22, 4  ;;  %s1224_s15 = smov [#allocation2]   ;;  %s1484_s24 = int_to_ptr.vmem [resolvable:$true] %s892_s24 }
  0x1d   : > { %1026 = vmatpush3.bf16.msra.mxu0 %v1142_v10  ;;  %v973_v10 = vld [vmem:[%s1538_s6] ss:$0 sm:$0xff]  ;;  %s1157_s21 = scalar_lea.vmem %s1484_s24, 256  ;;  %s1161_s16 = sshll.u32 %s1224_s15, 4  ;;  %s1162_s16 = int_to_ptr.vmem [resolvable:$false] %s1161_s16 }
  0x1e   : > { %v393_v8 = vsel %vm390_vm1, %v391_v6, %v392_v7  ;;  %v395_v9 = vsel %vm390_vm1, 0.0, %v391_v6  ;;  %1043 = vmatprep.subr.bf16.mxu0 %v1221_v0  ;;  %v1151_v7 = vld [vmem:[%s1539_s7] sm:$0xff]   ;;  %p1158_p11 = scmp.ne.s32.totalorder %s1484_s24, %s1157_s21  ;;  %s1163_s0 = scalar_lea.vmem %s1162_s16, 512 }
  0x1f   : > { %v1119_v11 = vpack.i.bf16 %v393_v8, %v395_v9  ;;  %1038 = vmatpush3.bf16.msra.mxu1 %v1146_v22  ;;  %v1152_v8 = vld [vmem:[%s1539_s7 + $0x8] sm:$0xff]   ;;  %v1153_v9 = vld [vmem:[%s1539_s7 + $0x10] sm:$0xff]   ;;  %p1164_p0 = scmp.lt.s32.totalorder %s1484_s24, %s1162_s16  ;;  %p1165_p1 = scmp.lt.s32.totalorder %s1163_s0, %s1157_s21 }
  0x20   : > { %1055 = vmatprep.subr.bf16.mxu1 %v1221_v0  ;;  %p1159_p12 = pnand %p1158_p11, %p1325_p5 }
  0x21   : > { %1120 = vrot.lane.b32.xlu0 %v1119_v11, %s1223_s13  ;;  %v1154_v11 = vld [vmem:[%s1539_s7 + $0x18] sm:$0xff]   ;;  %p1166_p2 = por %p1165_p1, %p1164_p0 }
  0x22   : > { %p1160_p13 = pneg %p1159_p12 }
  0x24   : > { %p1167_p3 = pnand %p1166_p2, %p1160_p13 }
  0x93   : > { %v1121_v12 = vpop.permute.xlu0 %1120 }
  0x94   : > { %v1123_v13 = vunpack.i.h.bf16 %v1121_v12  ;;  %v1122_v14 = vunpack.i.l.bf16 %v1121_v12 }
  0x96   : > { %v405_v15 = vsel %vm403_vm2, %v1358_v5, %v1123_v13  ;;  %v404_v16 = vsel %vm403_vm2, %v1356_v4, %v1122_v14 }
  0x97   : > { %v406_v17 = vpack.c.bf16 %v405_v15, %v404_v16 }
  0x99   : > { %1028 = vmatmul.mubr.msk.bf16.vlgmr.msra.gmra.mrb[0].mxu0 %vm446_vm3, %v406_v17 }
  0x9a   : > { %1051 = vmatprep.mubr.msk.bf16.mxu0 %vm1222_vm0, %v1221_v0  ;;  %1044 = vmatpush3.bf16.msra.mxu0 %v1147_v42 }
  0x9b   : > { %1045 = vmatprep.subr.bf16.mxu0 %v1221_v0 }
  0x9e   : > { %1046 = vmatpush3.bf16.msra.mxu0 %v1148_v43 }
  0x9f   : > { %1047 = vmatprep.subr.bf16.mxu0 %v1221_v0 }
  0xa2   : > { %1048 = vmatpush3.bf16.msra.mxu0 %v1149_v44 }
  0xa3   : > { %1049 = vmatprep.subr.bf16.mxu0 %v1221_v0 }
  0xa6   : > { %1050 = vmatpush3.bf16.msra.mxu0 %v1150_v53 }
  0xa7   : > { %1067 = vmatprep.subr.bf16.mxu0 %v1221_v0 }
 0x16c   : > { %v484_v23 = vpop.f32.mrb[0].mxu0 }
 0x16d   : > { %v485_v24 = vadd.f32 %v961_v21, %v484_v23  ;;  %v1029_v25 = vpop.f32.mrb[1].mxu0 }
 0x16e   : > { %v487_v26 = vpop.f32.mrb[2].mxu0 }
 0x16f   : > { %v491_v27 = vmax.f32 %v485_v24, 0.0  ;;  %v488_v28 = vadd.f32 %v961_v21, %v487_v26  ;;  %v1030_v29 = vpop.f32.mrb[3].mxu0 }
 0x171   : > { %v495_v30 = vrot.slane %v491_v27, 7  ;;  %v492_v31 = vmax.f32 %v488_v28, 0.0 }
 0x173   : > { %v496_v32 = vrot.slane %v492_v31, 7  ;;  %v499_v34 = vsel %vm390_vm1, 0.0, %v495_v30 }
 0x175   : > { %v497_v33 = vsel %vm390_vm1, %v495_v30, %v496_v32  ;;  %v1156_v32 = vld [vmem:[%s1541_s9 + $0x8] sm:$0xff]  }
 0x176   : > { %v1124_v35 = vpack.i.bf16 %v497_v33, %v499_v34  ;;  %v979_v33 = vld [vmem:[%s1540_s8] ss:$0 sm:$0xff] }
 0x178   : > { %1125 = vrot.lane.b32.xlu0 %v1124_v35, %s1223_s13 }
 0x1ea   : > { %v1126_v36 = vpop.permute.xlu0 %1125 }
 0x1eb   : > { %v1128_v37 = vunpack.i.h.bf16 %v1126_v36  ;;  %v1127_v38 = vunpack.i.l.bf16 %v1126_v36 }
 0x1ed   : > { %v508_v39 = vsel %vm403_vm2, %v492_v31, %v1128_v37  ;;  %v507_v40 = vsel %vm403_vm2, %v491_v27, %v1127_v38  ;;  %v1155_v31 = vld [vmem:[%s1541_s9] sm:$0xff]  }
 0x1ee   : > { %v509_v41 = vpack.c.bf16 %v508_v39, %v507_v40 }
 0x1f0   : > { %1040 = vmatmul.mubr.msk.bf16.vlgmr.msra.gmra.mrb[0].mxu1 %vm446_vm3, %v509_v41 }
 0x1f1   : > { %1063 = vmatprep.mubr.msk.bf16.mxu1 %vm1222_vm0, %v1221_v0  ;;  %1056 = vmatpush3.bf16.msra.mxu1 %v1151_v7 }
 0x1f2   : > { %1057 = vmatprep.subr.bf16.mxu1 %v1221_v0 }
 0x1f5   : > { %1058 = vmatpush3.bf16.msra.mxu1 %v1152_v8 }
 0x1f6   : > { %1059 = vmatprep.subr.bf16.mxu1 %v1221_v0 }
 0x1f9   : > { %1060 = vmatpush3.bf16.msra.mxu1 %v1153_v9 }
 0x1fa   : > { %1061 = vmatprep.subr.bf16.mxu1 %v1221_v0 }
 0x1fd   : > { %1062 = vmatpush3.bf16.msra.mxu1 %v1154_v11 }
 0x2c3   : > { %v586_v46 = vpop.f32.mrb[0].mxu1 }
 0x2c4   : > { %v587_v47 = vadd.f32 %v967_v45, %v586_v46  ;;  %v1041_v48 = vpop.f32.mrb[1].mxu1  ;;  %v985_v46 = vld [vmem:[%s1542_s10] ss:$0 sm:$0xff] }
 0x2c5   : > { %v589_v49 = vpop.f32.mrb[2].mxu1 }
 0x2c6   : > { %v593_v50 = vmax.f32 %v587_v47, 0.0  ;;  %v590_v51 = vadd.f32 %v967_v45, %v589_v49  ;;  %v1042_v52 = vpop.f32.mrb[3].mxu1 }
 0x2c8   : > { %v595_v54 = vadd.f32 %v593_v50, %v1356_v4  ;;  %v594_v55 = vmax.f32 %v590_v51, 0.0 }
 0x2ca   : > { %v1425_v56 = vmax.f32 %v595_v54, 0.0  ;;  %v596_v57 = vadd.f32 %v594_v55, %v1358_v5 }
 0x2cc   : > { %v1428_v58 = vmax.f32 %v596_v57, 0.0  ;;  %v602_v59 = vrot.slane %v1425_v56, 6 }
 0x2ce   : > { %v603_v60 = vrot.slane %v1428_v58, 6  ;;  %v606_v62 = vsel %vm601_vm4, 0.0, %v602_v59 }
 0x2d0   : > { %v604_v61 = vsel %vm601_vm4, %v602_v59, %v603_v60 }
 0x2d1   : > { %v1129_v63 = vpack.i.bf16 %v604_v61, %v606_v62 }
 0x2d3   : > { %1130 = vrot.lane.b32.xlu1 %v1129_v63, %s1223_s13 }
 0x345   : > { %v1131_v1 = vpop.permute.xlu1 %1130 }
 0x346   : > { %v1133_v2 = vunpack.i.h.bf16 %v1131_v1  ;;  %v1132_v3 = vunpack.i.l.bf16 %v1131_v1 }
 0x348   : > { %v615_v4 = vsel %vm403_vm2, %v1428_v58, %v1133_v2  ;;  %v614_v5 = vsel %vm403_vm2, %v1425_v56, %v1132_v3 }
 0x349   : > { %v616_v6 = vpack.c.bf16 %v615_v4, %v614_v5 }
 0x34b   : > { %1052 = vmatmul.mubr.msk.bf16.vlgmr.msra.gmra.mrb[4].mxu0 %vm446_vm3, %v616_v6 }
 0x34c   : > { %1071 = vmatprep.mubr.msk.bf16.mxu0 %vm1222_vm0, %v1221_v0  ;;  %1068 = vmatpush3.bf16.msra.mxu0 %v1155_v31 }
 0x34d   : > { %1069 = vmatprep.subr.bf16.mxu0 %v1221_v0 }
 0x350   : > { %1070 = vmatpush3.bf16.msra.mxu0 %v1156_v32 }
 0x41e   : > { %v693_v12 = vpop.f32.mrb[4].mxu0 }
 0x41f   : > { %v694_v13 = vadd.f32 %v973_v10, %v693_v12  ;;  %v1053_v14 = vpop.f32.mrb[5].mxu0 }
 0x420   : > { %v696_v15 = vpop.f32.mrb[6].mxu0 }
 0x421   : > { %v700_v16 = vmax.f32 %v694_v13, 0.0  ;;  %v697_v17 = vadd.f32 %v973_v10, %v696_v15  ;;  %v1054_v18 = vpop.f32.mrb[7].mxu0 }
 0x423   : > { %v704_v19 = vrot.slane %v700_v16, 6  ;;  %v701_v20 = vmax.f32 %v697_v17, 0.0 }
 0x425   : > { %v705_v21 = vrot.slane %v701_v20, 6  ;;  %v708_v23 = vsel %vm601_vm4, 0.0, %v704_v19 }
 0x427   : > { %v706_v22 = vsel %vm601_vm4, %v704_v19, %v705_v21 }
 0x428   : > { %v1134_v24 = vpack.i.bf16 %v706_v22, %v708_v23 }
 0x42a   : > { %1135 = vrot.lane.b32.xlu1 %v1134_v24, %s1223_s13 }
 0x49c   : > { %v1136_v25 = vpop.permute.xlu1 %1135 }
 0x49d   : > { %v1138_v26 = vunpack.i.h.bf16 %v1136_v25  ;;  %v1137_v27 = vunpack.i.l.bf16 %v1136_v25 }
 0x49f   : > { %v717_v28 = vsel %vm403_vm2, %v701_v20, %v1138_v26  ;;  %v716_v29 = vsel %vm403_vm2, %v700_v16, %v1137_v27 }
 0x4a0   : > { %v718_v30 = vpack.c.bf16 %v717_v28, %v716_v29 }
 0x4a2   : > { %1064 = vmatmul.mubr.msk.bf16.vlgmr.msra.gmra.mrb[4].mxu1 %vm446_vm3, %v718_v30 }
 0x575   : > { %v795_v34 = vpop.f32.mrb[4].mxu1 }
 0x576   : > { %v796_v35 = vadd.f32 %v979_v33, %v795_v34  ;;  %v1065_v36 = vpop.f32.mrb[5].mxu1 }
 0x577   : > { %v798_v37 = vpop.f32.mrb[6].mxu1 }
 0x578   : > { %v802_v38 = vmax.f32 %v796_v35, 0.0  ;;  %v799_v39 = vadd.f32 %v979_v33, %v798_v37  ;;  %v1066_v40 = vpop.f32.mrb[7].mxu1 }
 0x57a   : > { %v804_v0 = vadd.f32 %v802_v38, %v1425_v56  ;;  %v803_v41 = vmax.f32 %v799_v39, 0.0 }
 0x57c   : > { %v805_v42 = vadd.f32 %v803_v41, %v1428_v58  ;;  %v806_v43 = vmax.f32 %v804_v0, 0.0 }
 0x57e   : > { %v807_v44 = vmax.f32 %v805_v42, 0.0 }
 0x580   : > { %v808_v45 = vpack.c.bf16 %v807_v44, %v806_v43 }
 0x582   : > { %1072 = vmatmul.mubr.msk.bf16.vlgmr.msra.gmra.mrb[8].mxu0 %vm403_vm2, %v808_v45 }
 0x655   : > { %v869_v47 = vpop.f32.mrb[8].mxu0 }
 0x656   : > { %v870_v48 = vadd.f32 %v985_v46, %v869_v47  ;;  %v1073_v49 = vpop.f32.mrb[9].mxu0 }
 0x657   : > { %v872_v50 = vpop.f32.mrb[10].mxu0 }
 0x658   : > { %876 = vst [vmem:[%s379_s22] sm:$0xff] %v870_v48  ;;  %v873_v51 = vadd.f32 %v985_v46, %v872_v50  ;;  %v1074_v52 = vpop.f32.mrb[11].mxu0 }
 0x65a   : > { %877 = vst [vmem:[%s379_s22 + $0x8] sm:$0xff] %v873_v51 }
 0x65b   : > { %1170 = shalt.err (!%p1167_p3)
}
 0x65c   : > { %s1171_s12 = scalar_lea.hbm %s1489_s30, 256  ;;  %s1175_s29 = scalar_lea.hbm %s1543_s11, 512 }
 0x65d   : > { %p1172_p4 = scmp.ne.s32.totalorder %s1489_s30, %s1171_s12  ;;  %p1176_p9 = scmp.lt.u32.totalorder %s1489_s30, %s1543_s11 }
 0x65e   : > { %p1177_p10 = scmp.lt.u32.totalorder %s1175_s29, %s1171_s12  ;;  %p1179_p12 = scmp.lt.u32.totalorder %s1171_s12, %s1489_s30 }
 0x65f   : > { %p1173_p7 = pnand %p1172_p4, %p1325_p5 }
 0x660   : > { %p1178_p11 = por %p1177_p10, %p1176_p9 }
 0x661   : > { %p1174_p8 = pneg %p1173_p7 }
 0x662   : > { %p1180_p13 = por %p1179_p12, %p1178_p11 }
 0x664   : > { %p1181_p0 = pnand %p1180_p13, %p1174_p8 }
 0x666   : > { %1184 = shalt.err (!%p1181_p0)
}
 0x667   : > { %s1225_s0 = smov 128   ;;  %s1226_s21 = smov 8  }
 0x668   : > { %1075 = dma.vmem_to_hbm [thread:$0]  (%p1325_p5), %s1484_s24, 256, %s1489_s30, %s1491_s14, %s1225_s0, %s1225_s0, %s1226_s21  }
 0x669 PF: > { %p1081_p1 = scmp.ge.s32.totalorder %s1219_s20, 2  ;;  %s907_s16 = sand.u32 1, %s1207_s17  }
 0x66a   : > { %s908_s12 = scalar_lea.sflag [#allocation3], %s907_s16 }
 0x66b   : > { %p1078_p2 = pnand %p1081_p1, %p1329_p6 }
 0x66d   : > { %1202 = dma.done.wait (!%p1078_p2), %s908_s12, 256  }
 0x66e   : > { %1204 = vsyncadd (!%p1078_p2), %s908_s12, 4294967040  ;;  %p21_p3 = scmp.ge.s32.totalorder %s1312_s23, 4   ;;  %s1548_s17 = smov %s1211_s18 }
 0x66f   : > { %s1549_s18 = smov %s1215_s19  ;;  %s1550_s19 = smov %s1323_s26 }
 0x670   : > { %s1551_s20 = smov %s1312_s23  ;;  %23 = sbr.rel (!%p21_p3) target bundleno = 5 (0x5), region = 99 }
 0x677   :  { %913 = vsyncpa [#allocation3], 1 }
 0x678   :  { %915 = vsyncpa [#allocation3 + $0x1], 1 }

</bundles_post_ra>
